<compile_context>
chip_gen: v6e
topology: v6e:2x2x1
jax: 0.10.0
libtpu: 0.0.40
codegen_flags: <defaults>
</compile_context>

<pallas_src>
import jax
import jax.numpy as jnp
import numpy as np
from jax import lax
from jax.experimental import pallas as pl
from jax.experimental.pallas import tpu as pltpu

NORM_EPSILON = 1e-8
LANE = 128
SUBLANE = 8
MAX_TILE_B = 1024  # upper bound; actual tile_b is VMEM-budget driven


def _round_up(n, k):
    return (n + k - 1) // k * k


def _pad_to(a, target_shape):
    pads = [(0, t - s) for s, t in zip(a.shape, target_shape)]
    if all(p == (0, 0) for p in pads):
        return a
    return jnp.pad(a, pads)


def _vmem_capacity_bytes():
    try:
        cap = int(pltpu.get_tpu_info().vmem_capacity_bytes)
        if cap > 0:
            return cap
    except Exception:
        pass
    return 64 * 1024 * 1024  # conservative default (v7x per-TC VMEM)


# ----------------------------------------------------------------------------
# Kernel
# ----------------------------------------------------------------------------
def _multi_mlp_kernel(j_ref,     # SMEM (1,) int32 — consumed by the index_maps
                      x_ref,     # (TB, Ip)       bf16
                      w1_ref,    # (1, Ip, tH)    bf16   W1_eff[j] stripe (pre-transposed)
                      b1_ref,    # (1, 1, tH)     f32    b1_eff[j] stripe
                      w2_ref,    # (1, tH, Cp)    bf16   W2_eff[j] stripe (pre-transposed)
                      b2_ref,    # (1, 1, Cp)     f32    b2_eff[j]
                      out_ref,   # (TB, Cp)       f32
                      acc_ref):  # (TB, Cp)       f32    scratch accumulator
    del j_ref  # model selection happens in the BlockSpec index_maps
    h_idx = pl.program_id(1)

    # Hidden stripe: relu(x @ W1_stripe + b1_stripe).  Plain [M,K]x[K,N] dots —
    # weights are already transposed and bf16, so no per-tile rescale/cast/relayout.
    h = lax.dot_general(x_ref[...], w1_ref[0], (((1,), (0,)), ((), ())),
                        preferred_element_type=jnp.float32)
    h = jnp.maximum(h + b1_ref[0], 0.0).astype(jnp.bfloat16)        # (TB, tH)

    # Partial contribution of this hidden stripe to the output layer.
    part = lax.dot_general(h, w2_ref[0], (((1,), (0,)), ((), ())),
                           preferred_element_type=jnp.float32)       # (TB, Cp)

    @pl.when(h_idx == 0)
    def _():
        acc_ref[...] = jnp.zeros_like(acc_ref)

    acc_ref[...] += part

    @pl.when(h_idx == pl.num_programs(1) - 1)
    def _():
        out_ref[...] = (acc_ref[...] + b2_ref[0]).astype(out_ref.dtype)


# ----------------------------------------------------------------------------
# Parameter construction (mirrors create_linear_params / create_normed_params)
# ----------------------------------------------------------------------------
def create_linear_params(key, m, in_dim, out):
    kw, kb = jax.random.split(key)
    scaler = 1.0 / (in_dim ** 0.5)
    weight = 2.0 * (jax.random.uniform(kw, (m, out, in_dim), jnp.float32) - 0.5) * scaler
    bias = 2.0 * (jax.random.uniform(kb, (m, out), jnp.float32) - 0.5) * scaler
    weight_mag = jnp.sqrt(jnp.sum(weight ** 2, axis=0))   # norm2(weight) -> (out, in_dim)
    bias_mag = jnp.sqrt(jnp.sum(bias ** 2, axis=0))       # norm2(bias)   -> (out,)
    return weight, bias, weight_mag, bias_mag


def init_multi_mlp(key, m, num_input, num_hidden, num_classes):
    k1, k2 = jax.random.split(key)
    hidden = create_linear_params(k1, m, num_input, num_hidden)
    output = create_linear_params(k2, m, num_hidden, num_classes)
    return hidden + output


def prepare_multi_mlp_params(params):
    """Fold cross-model norms, magnitudes, transpose and bf16 cast into the stored
    weights ONCE per parameter update (NOT per forward). The kernel only streams the
    pre-folded bf16 weights of model j and the f32 effective biases."""
    w1, b1, w1m, b1m, w2, b2, w2m, b2m = params
    m, H, I = w1.shape
    C = w2.shape[1]
    Ip, Hp, Cp = (_round_up(d, LANE) for d in (I, H, C))

    def layer(w, b, wm, bm, outp, inp):
        wn = jnp.sqrt(jnp.sum(w * w, axis=0))                 # (out, in)
        bn = jnp.sqrt(jnp.sum(b * b, axis=0))                 # (out,)
        # Exact PyTorch op order: (p / (norm + eps)) * mag, for every model slice.
        w_eff = (w / (wn + NORM_EPSILON)) * wm                 # (m, out, in) f32
        b_eff = (b / (bn + NORM_EPSILON)) * bm                 # (m, out)     f32
        # Pre-transpose to [K, N] so the kernel does plain x @ W; pad lane-dense and
        # cast the weights to bf16 offline (4x fewer bytes in HBM and VMEM).
        w_t = jnp.transpose(w_eff, (0, 2, 1))                  # (m, in, out)
        w_p = _pad_to(w_t, (m, inp, outp)).astype(jnp.bfloat16)
        b_p = _pad_to(b_eff, (m, outp)).reshape(m, 1, outp).astype(jnp.float32)
        return w_p, b_p

    w1p, b1p = layer(w1, b1, w1m, b1m, Hp, Ip)
    w2p, b2p = layer(w2, b2, w2m, b2m, Cp, Hp)
    operands = (w1p, b1p, w2p, b2p)
    dims = dict(num_input=I, num_hidden=H, num_classes=C, Ip=Ip, Hp=Hp, Cp=Cp, m=m)
    return operands, dims


# ----------------------------------------------------------------------------
# Tiling / VMEM budgeting
# ----------------------------------------------------------------------------
def _estimate_vmem_bytes(tile_b, tile_h, ip, cp):
    bf16, f32 = 2, 4
    x_buf = 2 * tile_b * ip * bf16                 # x double buffer (bf16)
    w1_buf = 2 * ip * tile_h * bf16                # W1 stripe double buffer
    b1_buf = 2 * SUBLANE * tile_h * f32
    w2_buf = 2 * tile_h * cp * bf16                # W2 stripe double buffer
    b2_buf = 2 * SUBLANE * cp * f32
    out_buf = 2 * tile_b * cp * f32                # output double buffer
    acc = tile_b * cp * f32                        # accumulator scratch
    temps = tile_b * tile_h * (f32 + bf16) + tile_b * cp * f32 + tile_b * ip * bf16
    return int(1.25 * (x_buf + w1_buf + b1_buf + w2_buf + b2_buf + out_buf + acc + temps))


def _select_tiling(B, Ip, Hp, Cp, budget_bytes, max_tile_b=None, max_tile_h=None):
    """Largest batch tile first, then the largest hidden stripe that fits the budget."""
    b_cap = _round_up(min(B, MAX_TILE_B), SUBLANE)
    if max_tile_b is not None:
        b_cap = min(b_cap, _round_up(max_tile_b, SUBLANE))
    tb_cands = sorted({b_cap} | {t for t in (1024, 512, 256, 128, 64, 32, 16, 8)
                                 if t <= b_cap}, reverse=True)
    th_cands = [t for t in range(Hp, 0, -LANE) if Hp % t == 0]
    if max_tile_h is not None:
        th_cands = [t for t in th_cands if t <= max_tile_h] or [LANE]
    for tb in tb_cands:
        for th in th_cands:
            if _estimate_vmem_bytes(tb, th, Ip, Cp) <= budget_bytes:
                return tb, th
    return tb_cands[-1], th_cands[-1]


# ----------------------------------------------------------------------------
# Forward wrapper
# ----------------------------------------------------------------------------
def multi_mlp_forward(x, prepared, j, *, max_tile_b=None, max_tile_h=None):
    """Pallas implementation of MultiMlp.forward(x, j, is_variance)."""
    operands, dims = prepared
    w1p, b1p, w2p, b2p = operands
    I, C = dims["num_input"], dims["num_classes"]
    Ip, Hp, Cp = dims["Ip"], dims["Hp"], dims["Cp"]

    B = x.shape[0]
    assert x.shape[1] == I

    capacity = _vmem_capacity_bytes()
    budget = int(0.6 * capacity)                       # leave headroom for Mosaic scratch
    tile_b, tile_h = _select_tiling(B, Ip, Hp, Cp, budget, max_tile_b, max_tile_h)
    Bp = _round_up(B, tile_b)
    num_b, num_h = Bp // tile_b, Hp // tile_h

    # Stream the activations as bf16 (the kernel feeds the MXU bf16 anyway).
    x_p = _pad_to(x, (Bp, Ip)).astype(jnp.bfloat16)
    j_arr = jnp.asarray(j, jnp.int32).reshape((1,))

    est = _estimate_vmem_bytes(tile_b, tile_h, Ip, Cp)
    vmem_limit = int(min(max(32 * 1024 * 1024, 2 * est), int(0.8 * capacity)))

    out_p = pl.pallas_call(
        _multi_mlp_kernel,
        out_shape=jax.ShapeDtypeStruct((Bp, Cp), jnp.float32),
        grid_spec=pltpu.PrefetchScalarGridSpec(
            num_scalar_prefetch=1,
            grid=(num_b, num_h),                       # batch (parallel), H stripe (reduce)
            in_specs=[
                pl.BlockSpec((tile_b, Ip), lambda b, h, j_ref: (b, 0)),              # x
                pl.BlockSpec((1, Ip, tile_h), lambda b, h, j_ref: (j_ref[0], 0, h)),  # W1[j]
                pl.BlockSpec((1, 1, tile_h), lambda b, h, j_ref: (j_ref[0], 0, h)),   # b1[j]
                pl.BlockSpec((1, tile_h, Cp), lambda b, h, j_ref: (j_ref[0], h, 0)),  # W2[j]
                pl.BlockSpec((1, 1, Cp), lambda b, h, j_ref: (j_ref[0], 0, 0)),       # b2[j]
            ],
            out_specs=pl.BlockSpec((tile_b, Cp), lambda b, h, j_ref: (b, 0)),
            scratch_shapes=[pltpu.VMEM((tile_b, Cp), jnp.float32)],
        ),
        compiler_params=pltpu.CompilerParams(
            dimension_semantics=("parallel", "arbitrary"),
            vmem_limit_bytes=vmem_limit,
        ),
    )(j_arr, x_p, w1p, b1p, w2p, b2p)

    return out_p[:B, :C]


# ----------------------------------------------------------------------------
# References
# ----------------------------------------------------------------------------
def multi_mlp_reference(x, params, j):
    """Pure-f32 reference with the exact PyTorch op ordering."""
    w1, b1, w1m, b1m, w2, b2, w2m, b2m = params

    def get_applied(p, mag):
        norm = jnp.sqrt(jnp.sum(p ** 2, axis=0))
        return (p[j] / (norm + NORM_EPSILON)) * mag

    W1, B1 = get_applied(w1, w1m), get_applied(b1, b1m)
    W2, B2 = get_applied(w2, w2m), get_applied(b2, b2m)
    h = jnp.maximum(x @ W1.T + B1, 0.0)
    return h @ W2.T + B2


def multi_mlp_reference_bf16(x, params, j):
    """Reference emulating the kernel's bf16 MXU operands / f32 accumulation."""
    w1, b1, w1m, b1m, w2, b2, w2m, b2m = params

    def eff(p, mag):
        norm = jnp.sqrt(jnp.sum(p ** 2, axis=0))
        return (p[j] / (norm + NORM_EPSILON)) * mag

    W1, B1 = eff(w1, w1m).astype(jnp.bfloat16), eff(b1, b1m)
    W2, B2 = eff(w2, w2m).astype(jnp.bfloat16), eff(b2, b2m)
    xb = x.astype(jnp.bfloat16)
    h = lax.dot_general(xb, W1, (((1,), (1,)), ((), ())),
                        preferred_element_type=jnp.float32) + B1
    h = jnp.maximum(h, 0.0).astype(jnp.bfloat16)
    return lax.dot_general(h, W2, (((1,), (1,)), ((), ())),
                           preferred_element_type=jnp.float32) + B2


def _check(out, x, params, j):
    ref_bf16 = multi_mlp_reference_bf16(x, params, j)
    ref_f32 = multi_mlp_reference(x, params, j)
    assert np.allclose(np.asarray(out), np.asarray(ref_bf16), atol=5e-3, rtol=5e-3), (
        "mismatch vs bf16-emulating reference")
    assert np.allclose(np.asarray(out), np.asarray(ref_f32), atol=5e-2, rtol=5e-2), (
        "mismatch vs f32 reference beyond bf16 MXU tolerance")


if __name__ == "__main__":
    key = jax.random.PRNGKey(0)

    # --- Test 1: tiny shapes (single batch tile, single H stripe) ---------------
    m, num_input, num_hidden, num_classes = 3, 16, 32, 8
    batch, j = 8, 1
    kx, kp, kx2, kp2 = jax.random.split(key, 4)
    x = jax.random.normal(kx, (batch, num_input), jnp.float32)
    params = init_multi_mlp(kp, m, num_input, num_hidden, num_classes)
    prepared = prepare_multi_mlp_params(params)

    out = jax.block_until_ready(multi_mlp_forward(x, prepared, j))
    assert out.shape == (batch, num_classes)
    _check(out, x, params, j)

    # --- Test 2: force multiple batch tiles and multiple H stripes --------------
    # (exercises the accumulator init/finalize path and the "parallel" batch axis)
    m2, ni2, nh2, nc2 = 3, 48, 200, 24
    batch2, j2 = 40, 2
    x2 = jax.random.normal(kx2, (batch2, ni2), jnp.float32)
    params2 = init_multi_mlp(kp2, m2, ni2, nh2, nc2)
    prepared2 = prepare_multi_mlp_params(params2)

    out2 = jax.block_until_ready(
        multi_mlp_forward(x2, prepared2, j2, max_tile_b=16, max_tile_h=128))
    assert out2.shape == (batch2, nc2)
    _check(out2, x2, params2, j2)

    print("KERNEL_OK")
</pallas_src>

<mosaic_0001>
module attributes {stable_mosaic.version = 11 : i64} {
  func.func @_multi_mlp_kernel(%arg0: i32, %arg1: i32, %arg2: memref<1xi32, #tpu.memory_space<smem>>, %arg3: memref<8x128xbf16, #tpu.memory_space<vmem>>, %arg4: memref<1x128x128xbf16, #tpu.memory_space<vmem>>, %arg5: memref<1x1x128xf32, #tpu.memory_space<vmem>>, %arg6: memref<1x128x128xbf16, #tpu.memory_space<vmem>>, %arg7: memref<1x1x128xf32, #tpu.memory_space<vmem>>, %arg8: memref<8x128xf32, #tpu.memory_space<vmem>>, %arg9: memref<8x128xf32, #tpu.memory_space<vmem>>) attributes {dimension_semantics = [#tpu.dimension_semantics<parallel>, #tpu.dimension_semantics<arbitrary>], iteration_bounds = array<i64: 1, 1>, scalar_prefetch = 1 : i64, scratch_operands = 1 : i64, tpu.core_type = #tpu.core_type<tc>, window_params = [{transform_indices = @transform_0, window_bounds = array<i64: 8, 128>}, {transform_indices = @transform_1, window_bounds = array<i64: 1, 128, 128>}, {transform_indices = @transform_2, window_bounds = array<i64: 1, 1, 128>}, {transform_indices = @transform_3, window_bounds = array<i64: 1, 128, 128>}, {transform_indices = @transform_4, window_bounds = array<i64: 1, 1, 128>}, {transform_indices = @transform_5, window_bounds = array<i64: 8, 128>}]} {
    %c0 = arith.constant 0 : index
    %c0_0 = arith.constant 0 : index
    %0 = vector.load %arg3[%c0, %c0_0] : memref<8x128xbf16, #tpu.memory_space<vmem>>, vector<8x128xbf16>
    %c0_1 = arith.constant 0 : index
    %c0_2 = arith.constant 0 : index
    %c0_3 = arith.constant 0 : index
    %1 = vector.load %arg4[%c0_1, %c0_2, %c0_3] : memref<1x128x128xbf16, #tpu.memory_space<vmem>>, vector<1x128x128xbf16>
    %2 = vector.shape_cast %1 : vector<1x128x128xbf16> to vector<128x128xbf16>
    %cst = arith.constant dense<0.000000e+00> : vector<8x128xf32>
    %3 = tpu.matmul %0, %2, %cst {dimension_numbers = #tpu.dot_dimension_numbers<[1], [0], [0], [1], [0, 0, 1, 1], [], []>} : vector<8x128xbf16>, vector<128x128xbf16>, vector<8x128xf32> -> vector<8x128xf32>
    %c0_4 = arith.constant 0 : index
    %c0_5 = arith.constant 0 : index
    %c0_6 = arith.constant 0 : index
    %4 = vector.load %arg5[%c0_4, %c0_5, %c0_6] : memref<1x1x128xf32, #tpu.memory_space<vmem>>, vector<1x1x128xf32>
    %5 = vector.shape_cast %4 : vector<1x1x128xf32> to vector<1x128xf32>
    %6 = vector.broadcast %5 : vector<1x128xf32> to vector<8x128xf32>
    %7 = arith.addf %3, %6 : vector<8x128xf32>
    %cst_7 = arith.constant 0.000000e+00 : f32
    %8 = vector.broadcast %cst_7 : f32 to vector<8x128xf32>
    %9 = arith.maximumf %7, %8 : vector<8x128xf32>
    %10 = arith.truncf %9 : vector<8x128xf32> to vector<8x128xbf16>
    %c0_8 = arith.constant 0 : index
    %c0_9 = arith.constant 0 : index
    %c0_10 = arith.constant 0 : index
    %11 = vector.load %arg6[%c0_8, %c0_9, %c0_10] : memref<1x128x128xbf16, #tpu.memory_space<vmem>>, vector<1x128x128xbf16>
    %12 = vector.shape_cast %11 : vector<1x128x128xbf16> to vector<128x128xbf16>
    %cst_11 = arith.constant dense<0.000000e+00> : vector<8x128xf32>
    %13 = tpu.matmul %10, %12, %cst_11 {dimension_numbers = #tpu.dot_dimension_numbers<[1], [0], [0], [1], [0, 0, 1, 1], [], []>} : vector<8x128xbf16>, vector<128x128xbf16>, vector<8x128xf32> -> vector<8x128xf32>
    %c0_i32 = arith.constant 0 : i32
    %14 = arith.cmpi eq, %arg1, %c0_i32 : i32
    %15 = arith.extui %14 : i1 to i32
    %c0_i32_12 = arith.constant 0 : i32
    %16 = arith.cmpi ne, %15, %c0_i32_12 : i32
    scf.if %16 {
      %cst_19 = arith.constant 0.000000e+00 : f32
      %23 = vector.broadcast %cst_19 : f32 to vector<8x128xf32>
      %c0_20 = arith.constant 0 : index
      %c0_21 = arith.constant 0 : index
      %24 = vector.load %arg9[%c0_20, %c0_21] : memref<8x128xf32, #tpu.memory_space<vmem>>, vector<8x128xf32>
      tpu.vector_store %arg9[%c0_20, %c0_21], %23 {strides = array<i32>} : memref<8x128xf32, #tpu.memory_space<vmem>>, vector<8x128xf32>,
    } else {
    }
    %c0_13 = arith.constant 0 : index
    %c0_14 = arith.constant 0 : index
    %17 = vector.load %arg9[%c0_13, %c0_14] : memref<8x128xf32, #tpu.memory_space<vmem>>, vector<8x128xf32>
    %18 = arith.addf %17, %13 : vector<8x128xf32>
    %c0_15 = arith.constant 0 : index
    %c0_16 = arith.constant 0 : index
    %19 = vector.load %arg9[%c0_15, %c0_16] : memref<8x128xf32, #tpu.memory_space<vmem>>, vector<8x128xf32>
    tpu.vector_store %arg9[%c0_15, %c0_16], %18 {strides = array<i32>} : memref<8x128xf32, #tpu.memory_space<vmem>>, vector<8x128xf32>,
    %c0_i32_17 = arith.constant 0 : i32
    %20 = arith.cmpi eq, %arg1, %c0_i32_17 : i32
    %21 = arith.extui %20 : i1 to i32
    %c0_i32_18 = arith.constant 0 : i32
    %22 = arith.cmpi ne, %21, %c0_i32_18 : i32
    scf.if %22 {
      %c0_19 = arith.constant 0 : index
      %c0_20 = arith.constant 0 : index
      %23 = vector.load %arg9[%c0_19, %c0_20] : memref<8x128xf32, #tpu.memory_space<vmem>>, vector<8x128xf32>
      %c0_21 = arith.constant 0 : index
      %c0_22 = arith.constant 0 : index
      %c0_23 = arith.constant 0 : index
      %24 = vector.load %arg7[%c0_21, %c0_22, %c0_23] : memref<1x1x128xf32, #tpu.memory_space<vmem>>, vector<1x1x128xf32>
      %25 = vector.shape_cast %24 : vector<1x1x128xf32> to vector<1x128xf32>
      %26 = vector.broadcast %25 : vector<1x128xf32> to vector<8x128xf32>
      %27 = arith.addf %23, %26 : vector<8x128xf32>
      %c0_24 = arith.constant 0 : index
      %c0_25 = arith.constant 0 : index
      %28 = vector.load %arg8[%c0_24, %c0_25] : memref<8x128xf32, #tpu.memory_space<vmem>>, vector<8x128xf32>
      tpu.vector_store %arg8[%c0_24, %c0_25], %27 {strides = array<i32>} : memref<8x128xf32, #tpu.memory_space<vmem>>, vector<8x128xf32>,
    } else {
    }
    return
  }
  func.func @transform_0(%arg0: i32, %arg1: i32, %arg2: memref<1xi32, #tpu.memory_space<smem>>) -> (i32, i32) {
    %c0_i32 = arith.constant 0 : i32
    %c0_i32_0 = arith.constant 0 : i32
    return %arg0, %c0_i32 : i32, i32
  }
  func.func @transform_1(%arg0: i32, %arg1: i32, %arg2: memref<1xi32, #tpu.memory_space<smem>>) -> (i32, i32, i32) {
    %c0 = arith.constant 0 : index
    %0 = memref.load %arg2[%c0] : memref<1xi32, #tpu.memory_space<smem>>
    %c0_i32 = arith.constant 0 : i32
    %c0_i32_0 = arith.constant 0 : i32
    return %0, %c0_i32, %arg1 : i32, i32, i32
  }
  func.func @transform_2(%arg0: i32, %arg1: i32, %arg2: memref<1xi32, #tpu.memory_space<smem>>) -> (i32, i32, i32) {
    %c0 = arith.constant 0 : index
    %0 = memref.load %arg2[%c0] : memref<1xi32, #tpu.memory_space<smem>>
    %c0_i32 = arith.constant 0 : i32
    %c0_i32_0 = arith.constant 0 : i32
    return %0, %c0_i32, %arg1 : i32, i32, i32
  }
  func.func @transform_3(%arg0: i32, %arg1: i32, %arg2: memref<1xi32, #tpu.memory_space<smem>>) -> (i32, i32, i32) {
    %c0 = arith.constant 0 : index
    %0 = memref.load %arg2[%c0] : memref<1xi32, #tpu.memory_space<smem>>
    %c0_i32 = arith.constant 0 : i32
    %c0_i32_0 = arith.constant 0 : i32
    return %0, %arg1, %c0_i32 : i32, i32, i32
  }
  func.func @transform_4(%arg0: i32, %arg1: i32, %arg2: memref<1xi32, #tpu.memory_space<smem>>) -> (i32, i32, i32) {
    %c0 = arith.constant 0 : index
    %0 = memref.load %arg2[%c0] : memref<1xi32, #tpu.memory_space<smem>>
    %c0_i32 = arith.constant 0 : i32
    %c0_i32_0 = arith.constant 0 : i32
    %c0_i32_1 = arith.constant 0 : i32
    return %0, %c0_i32, %c0_i32_0 : i32, i32, i32
  }
  func.func @transform_5(%arg0: i32, %arg1: i32, %arg2: memref<1xi32, #tpu.memory_space<smem>>) -> (i32, i32) {
    %c0_i32 = arith.constant 0 : i32
    %c0_i32_0 = arith.constant 0 : i32
    return %arg0, %c0_i32 : i32, i32
  }
}

</mosaic_0001>

<bundles_post_ra>
// kernel: tpu_custom_call.1
= control target key start
LH: loop header
LB: loop body
LE: loop exit
PB: predicated region body
PF: predicated region fallthrough
CT: control target
= control target key end

     0   :  { %12 = vsyncpa [#allocation6], 0  ;;  %s656_s0 = inlined_call_operand.<no memory space> [shape: s32[1], index: 0, kind: input, shape index: {}]   ;;  %s657_s1 = inlined_call_operand.hbm [shape: bf16[8,128], index: 1, kind: input, shape index: {}]   ;;  %s658_s2 = inlined_call_operand.hbm [shape: bf16[3,128,128], index: 2, kind: input, shape index: {}]   ;;  %s659_s3 = inlined_call_operand.vmem [shape: f32[3,1,128], index: 3, kind: input, shape index: {}]   ;;  %s660_s4 = inlined_call_operand.hbm [shape: bf16[3,128,128], index: 4, kind: input, shape index: {}]   ;;  %s661_s5 = inlined_call_operand.vmem [shape: f32[3,1,128], index: 5, kind: input, shape index: {}]   ;;  %s662_s6 = inlined_call_operand.hbm [shape: f32[8,128], index: 6, kind: output, shape index: {}]  }
   0x1   :  { %13 = vsyncpa [#allocation9], 0  ;;  %s388_s23 = sshll.u32 %s656_s0, 10 }
   0x2   :  { %14 = vsyncpa [#allocation7], 0  ;;  %s33_s26 = scalar_lea.hbm %s658_s2, %s388_s23  ;;  %s562_s27 = smov [#allocation8]  }
   0x3   :  { %s34_s28 = sshll.u32 %s562_s27, 4  ;;  %s614_s7 = scalar_lea.hbm %s660_s4, %s388_s23  ;;  %s35_s28 = int_to_ptr.vmem [resolvable:$true] %s34_s28 }
   0x4   :  { %s472_s8 = scalar_lea.hbm %s33_s26, 1024  ;;  %s474_s11 = scalar_lea.hbm %s658_s2, 3072 }
   0x5   :  { %p473_p0 = scmp.ne.s32.totalorder %s33_s26, %s472_s8  ;;  %p475_p1 = scmp.lt.s32.totalorder %s33_s26, %s658_s2 }
   0x6   :  { %p476_p2 = scmp.lt.s32.totalorder %s474_s11, %s472_s8 }
   0x8   :  { %p477_p3 = por %p476_p2, %p475_p1 }
   0xa   :  { %p478_p4 = pnand %p477_p3, %p473_p0 }
   0xc   :  { %481 = shalt.err (!%p478_p4)
}
   0xd   :  { %s482_s14 = scalar_lea.vmem %s35_s28, 1024  ;;  %p487_p6 = scmp.lt.s32.totalorder %s35_s28, %s35_s28 }
   0xe   :  { %p483_p5 = scmp.ne.s32.totalorder %s35_s28, %s482_s14  ;;  %p488_p7 = scmp.lt.s32.totalorder %s482_s14, %s482_s14 }
  0x10   :  { %p489_p8 = por %p488_p7, %p487_p6 }
  0x12   :  { %p490_p9 = pnand %p489_p8, %p483_p5 }
  0x14   :  { %493 = shalt.err (!%p490_p9)
}
  0x15   :  { %s563_s15 = smov 64   ;;  %s564_s16 = smov 4  }
  0x16   :  { %40 = dma.hbm_to_vmem [thread:$0]  %s33_s26, 1024, %s35_s28, [#allocation9], %s563_s15, %s563_s15, %s564_s16  }
  0x17   :  { %s565_s17 = smov [#allocation5]   ;;  %s566_s2 = smov [#allocation10]  }
  0x18   :  { %s21_s18 = sshll.u32 %s565_s17, 4  ;;  %s57_s19 = sshll.u32 %s566_s2, 4  ;;  %s22_s18 = int_to_ptr.vmem [resolvable:$true] %s21_s18  ;;  %s58_s19 = int_to_ptr.vmem [resolvable:$true] %s57_s19 }
  0x19   :  { %s502_s20 = scalar_lea.vmem %s22_s18, 64  ;;  %p507_p11 = scmp.lt.s32.totalorder %s22_s18, %s22_s18 }
  0x1a   :  { %p503_p10 = scmp.ne.s32.totalorder %s22_s18, %s502_s20  ;;  %p508_p12 = scmp.lt.s32.totalorder %s502_s20, %s502_s20 }
  0x1c   :  { %p509_p13 = por %p508_p12, %p507_p11 }
  0x1e   :  { %p510_p0 = pnand %p509_p13, %p503_p10 }
  0x20   :  { %513 = shalt.err (!%p510_p0)
}
  0x21   :  { %24 = dma.hbm_to_vmem [thread:$0]  %s657_s1, 64, %s22_s18, [#allocation6]  }
  0x22   :  { %s514_s23 = scalar_lea.hbm %s614_s7, 1024  ;;  %s516_s26 = scalar_lea.hbm %s660_s4, 3072 }
  0x23   :  { %p515_p1 = scmp.ne.s32.totalorder %s614_s7, %s514_s23  ;;  %p517_p2 = scmp.lt.s32.totalorder %s614_s7, %s660_s4 }
  0x24   :  { %p518_p3 = scmp.lt.s32.totalorder %s516_s26, %s514_s23 }
  0x26   :  { %p519_p4 = por %p518_p3, %p517_p2 }
  0x28   :  { %p520_p5 = pnand %p519_p4, %p515_p1 }
  0x2a   :  { %523 = shalt.err (!%p520_p5)
}
  0x2b   :  { %s524_s29 = scalar_lea.vmem %s58_s19, 1024  ;;  %p529_p7 = scmp.lt.s32.totalorder %s58_s19, %s58_s19 }
  0x2c   :  { %p525_p6 = scmp.ne.s32.totalorder %s58_s19, %s524_s29  ;;  %p530_p8 = scmp.lt.s32.totalorder %s524_s29, %s524_s29 }
  0x2e   :  { %p531_p9 = por %p530_p8, %p529_p7 }
  0x30   :  { %p532_p10 = pnand %p531_p9, %p525_p6 }
  0x32   :  { %535 = shalt.err (!%p532_p10)
}
  0x33   :  { %63 = dma.hbm_to_vmem [thread:$0]  %s614_s7, 1024, %s58_s19, [#allocation9], %s563_s15, %s563_s15, %s564_s16  }
  0x34   :  { %556 = dma.done.wait [#allocation6], 64  }
  0x35   :  { %557 = vsyncadd [#allocation6], 4294967232 }
  0x36   :  { %558 = dma.done.wait [#allocation9], 2048  }
  0x37   :  { %559 = vsyncadd [#allocation9], 4294965248  ;;  %v567_v0 = vmov 0.0   ;;  %vm568_vm0 = vmmov 0   ;;  %v456_v1 = vld [vmem:[#allocation8 + $0x38] sm:$0xff]   ;;  %v457_v2 = vld [vmem:[#allocation8 + $0x30] sm:$0xff]  }
  0x38   :  { %408 = vmatprep.subr.bf16.mxu0 %v567_v0  ;;  %424 = vmatprep.mubr.msk.bf16.mxu0 %vm568_vm0, %v567_v0  ;;  %v458_v3 = vld [vmem:[#allocation8 + $0x28] sm:$0xff]   ;;  %v464_v4 = vld [vmem:[#allocation10 + $0x38] sm:$0xff]   ;;  %v459_v5 = vld [vmem:[#allocation8 + $0x20] sm:$0xff]   ;;  %p90_p11 = scmp.lt.s32.totalorder %s656_s0, 2  ;;  %s569_s14 = smov [#allocation11]  }
  0x39   :  { %428 = vmatprep.subr.bf16.mxu1 %v567_v0  ;;  %444 = vmatprep.mubr.msk.bf16.mxu1 %vm568_vm0, %v567_v0  ;;  %v465_v6 = vld [vmem:[#allocation10 + $0x30] sm:$0xff]   ;;  %v460_v7 = vld [vmem:[#allocation8 + $0x18] sm:$0xff]   ;;  %v466_v8 = vld [vmem:[#allocation10 + $0x28] sm:$0xff]   ;;  %s346_s15 = sshll.u32 %s569_s14, 4  ;;  %s347_s15 = int_to_ptr.vmem [resolvable:$true] %s346_s15 }
  0x3a   :  { %409 = vmatpush3.bf16.msra.mxu0 %v456_v1  ;;  %429 = vmatpush3.bf16.msra.mxu1 %v464_v4  ;;  %v461_v9 = vld [vmem:[#allocation8 + $0x10] sm:$0xff]   ;;  %v467_v10 = vld [vmem:[#allocation10 + $0x20] sm:$0xff]   ;;  %v462_v11 = vld [vmem:[#allocation8 + $0x8] sm:$0xff]   ;;  %s664_s0 = smov (!%p90_p11, %s656_s0), 2  ;;  %p541_p13 = scmp.lt.s32.totalorder %s347_s15, %s347_s15 }
  0x3b   :  { %410 = vmatprep.subr.bf16.mxu0 %v567_v0  ;;  %430 = vmatprep.subr.bf16.mxu1 %v567_v0  ;;  %v468_v12 = vld [vmem:[#allocation10 + $0x18] sm:$0xff]   ;;  %v463_v13 = vld [vmem:[#allocation8] sm:$0xff]   ;;  %v469_v14 = vld [vmem:[#allocation10 + $0x10] sm:$0xff]   ;;  %s92_s10 = scalar_lea.vmem %s659_s3, %s664_s0  ;;  %s98_s13 = scalar_lea.vmem %s661_s5, %s664_s0 }
  0x3c   :  { %v101_v15 = vld [vmem:[#allocation5] sm:$0xf]  ;;  %v470_v16 = vld [vmem:[#allocation10 + $0x8] sm:$0xff]   ;;  %v471_v17 = vld [vmem:[#allocation10] sm:$0xff]   ;;  %s536_s3 = scalar_lea.vmem %s347_s15, 128 }
  0x3d   :  { %v370_v18 = vld [vmem:[%s92_s10] ss:$0 sm:$0xff]  ;;  %p537_p12 = scmp.ne.s32.totalorder %s347_s15, %s536_s3  ;;  %p542_p0 = scmp.lt.s32.totalorder %s536_s3, %s536_s3 }
  0x3e   :  { %411 = vmatpush3.bf16.msra.mxu0 %v457_v2  ;;  %431 = vmatpush3.bf16.msra.mxu1 %v465_v6  ;;  %v387_v26 = vld [vmem:[%s98_s13] ss:$0 sm:$0xff] }
  0x3f   :  { %412 = vmatprep.subr.bf16.mxu0 %v567_v0  ;;  %432 = vmatprep.subr.bf16.mxu1 %v567_v0  ;;  %p543_p1 = por %p542_p0, %p541_p13 }
  0x41   :  { %p544_p2 = pnand %p543_p1, %p537_p12 }
  0x42   :  { %413 = vmatpush3.bf16.msra.mxu0 %v458_v3  ;;  %433 = vmatpush3.bf16.msra.mxu1 %v466_v8 }
  0x43   :  { %414 = vmatprep.subr.bf16.mxu0 %v567_v0  ;;  %434 = vmatprep.subr.bf16.mxu1 %v567_v0 }
  0x46   :  { %415 = vmatpush3.bf16.msra.mxu0 %v459_v5  ;;  %435 = vmatpush3.bf16.msra.mxu1 %v467_v10 }
  0x47   :  { %416 = vmatprep.subr.bf16.mxu0 %v567_v0  ;;  %436 = vmatprep.subr.bf16.mxu1 %v567_v0 }
  0x4a   :  { %417 = vmatpush3.bf16.msra.mxu0 %v460_v7  ;;  %437 = vmatpush3.bf16.msra.mxu1 %v468_v12 }
  0x4b   :  { %418 = vmatprep.subr.bf16.mxu0 %v567_v0  ;;  %438 = vmatprep.subr.bf16.mxu1 %v567_v0 }
  0x4e   :  { %419 = vmatpush3.bf16.msra.mxu0 %v461_v9  ;;  %439 = vmatpush3.bf16.msra.mxu1 %v469_v14 }
  0x4f   :  { %420 = vmatprep.subr.bf16.mxu0 %v567_v0  ;;  %440 = vmatprep.subr.bf16.mxu1 %v567_v0 }
  0x52   :  { %421 = vmatpush3.bf16.msra.mxu0 %v462_v11  ;;  %441 = vmatpush3.bf16.msra.mxu1 %v470_v16 }
  0x53   :  { %422 = vmatprep.subr.bf16.mxu0 %v567_v0  ;;  %442 = vmatprep.subr.bf16.mxu1 %v567_v0 }
  0x56   :  { %423 = vmatpush3.bf16.msra.mxu0 %v463_v13  ;;  %443 = vmatpush3.bf16.msra.mxu1 %v471_v17 }
  0x59   :  { %425 = vmatmul.mubr.bf16.vlgmr.msra.gmra.mxu0 %v101_v15 }
 0x119   :  { %v207_v19 = vpop.f32.mrf.mxu0 }
 0x11a   :  { %v208_v20 = vadd.f32 %v370_v18, %v207_v19 }
 0x11b   :  { %v426_v21 = vpop.f32.mrf.mxu0 }
 0x11c   :  { %v213_v22 = vmax.f32 %v208_v20, 0.0 }
 0x11d   :  { %v210_v23 = vpop.f32.mrf.mxu0 }
 0x11e   :  { %v214_v24 = vpack.c.bf16 %v213_v22, %v213_v22 }
 0x11f   :  { %v427_v25 = vpop.f32.mrf.mxu0 }
 0x120   :  { %445 = vmatmul.mubr.bf16.vlgmr.msra.gmra.mxu1 %v214_v24 }
 0x1e0   :  { %v313_v27 = vpop.f32.mrf.mxu1 }
 0x1e1   :  { %v338_v28 = vadd.f32 %v387_v26, %v313_v27 }
 0x1e2   :  { %v446_v29 = vpop.f32.mrf.mxu1 }
 0x1e3   :  { %339 = vst [vmem:[#allocation11] sm:$0xff] %v338_v28 }
 0x1e4   :  { %v316_v30 = vpop.f32.mrf.mxu1 }
 0x1e5   :  { %547 = shalt.err (!%p544_p2)
}
 0x1e6   :  { %349 = dma.vmem_to_hbm [thread:$0]  %s347_s15, 128, %s662_s6, [#allocation7]   ;;  %v447_v31 = vpop.f32.mrf.mxu1 }
 0x1e7   :  { %560 = dma.done.wait [#allocation7], 128  }
 0x1e8   :  { %561 = vsyncadd [#allocation7], 4294967168 }
 0x1e9   :  { %353 = vsyncpa [#allocation6], 1 }
 0x1ea   :  { %354 = vsyncpa [#allocation9], 1 }
 0x1eb   :  { %355 = vsyncpa [#allocation7], 1 }

</bundles_post_ra>
